<compile_context>
chip_gen: v7x
topology: tpu7x:2x2x1
jax: 0.10.0
libtpu: 0.0.40
codegen_flags: <defaults>
</compile_context>

<pallas_src>
import functools

import jax
import jax.numpy as jnp
from jax.experimental import pallas as pl
from jax.experimental.pallas import tpu as pltpu

_LANES = 128
_SUBLANES = 8


def _round_up(x: int, m: int) -> int:
    return -(-x // m) * m


# ----------------------------------------------------------------------------
# Scalar path: exact nn.Linear(1,1)(torch.Tensor([[state]])) semantics.
# ----------------------------------------------------------------------------
def _value_net_scalar_kernel(w_ref, b_ref, x_ref, o_ref):
    # w_ref: (1,) f32 SMEM   -- Linear weight, flattened
    # b_ref: (1,) f32 SMEM   -- Linear bias
    # x_ref: (1,) f32 SMEM   -- the state scalar
    # o_ref: (1, 1) f32 VMEM -- output [[state * w + b]]
    val = x_ref[0] * w_ref[0] + b_ref[0]          # scalar FMA on the scalar/VPU path
    o_ref[...] = jnp.full((1, 1), val, dtype=jnp.float32)


@jax.jit
def value_net_forward(state, weight, bias):
    """Pallas equivalent of ValueNet.forward(state) -> (1, 1) float32."""
    if weight.shape != (1, 1):
        raise ValueError(f"ValueNet expects weight shape (1, 1), got {weight.shape}")
    if bias.shape != (1,):
        raise ValueError(f"ValueNet expects bias shape (1,), got {bias.shape}")

    x = jnp.asarray(state, dtype=jnp.float32).reshape(1)   # the single state value
    w = weight.reshape(1).astype(jnp.float32)               # (1,) SMEM -> 4 bytes padded
    b = bias.reshape(1).astype(jnp.float32)

    smem_spec = pl.BlockSpec(memory_space=pltpu.MemorySpace.SMEM)
    out_spec = pl.BlockSpec((1, 1), lambda: (0, 0))          # full-array block

    return pl.pallas_call(
        _value_net_scalar_kernel,
        out_shape=jax.ShapeDtypeStruct((1, 1), jnp.float32),
        grid=(),
        in_specs=[smem_spec, smem_spec, smem_spec],
        out_specs=out_spec,
    )(w, b, x)


# ----------------------------------------------------------------------------
# Batched path: many states per invocation, lane-dense (rows, 128) tiles.
# ----------------------------------------------------------------------------
def _value_net_batched_kernel(w_ref, b_ref, x_ref, o_ref):
    # w_ref, b_ref: (1,) f32 SMEM
    # x_ref, o_ref: (block_rows, 128) f32 VMEM
    w = w_ref[0]
    b = b_ref[0]
    o_ref[...] = x_ref[...] * w + b                # VPU FMA; deliberately no MXU


@functools.partial(jax.jit, static_argnames=("block_rows",))
def value_net_forward_batch(states, weight, bias, block_rows=512):
    """Vectorized ValueNet forward: (B,) states -> (B,) values (= state*w + b)."""
    x = jnp.asarray(states, dtype=jnp.float32).reshape(-1)
    n = x.shape[0]

    rows = _round_up(max(n, 1), _LANES) // _LANES
    rows = _round_up(rows, _SUBLANES)
    tr = max(_SUBLANES, (min(block_rows, rows) // _SUBLANES) * _SUBLANES)
    rows = _round_up(rows, tr)
    padded = rows * _LANES

    x = jnp.pad(x, (0, padded - n)).reshape(rows, _LANES)
    w = weight.reshape(1).astype(jnp.float32)
    b = bias.reshape(1).astype(jnp.float32)

    smem_spec = pl.BlockSpec(memory_space=pltpu.MemorySpace.SMEM)
    tile_spec = pl.BlockSpec((tr, _LANES), lambda i: (i, 0))

    out = pl.pallas_call(
        _value_net_batched_kernel,
        out_shape=jax.ShapeDtypeStruct((rows, _LANES), jnp.float32),
        grid=(rows // tr,),
        in_specs=[smem_spec, smem_spec, tile_spec],
        out_specs=tile_spec,
        compiler_params=pltpu.CompilerParams(
            dimension_semantics=("parallel",),        # dual-TC sharding on v7x
            vmem_limit_bytes=32 * 1024 * 1024,        # safe on v5e/v6e/v7x
        ),
    )(w, b, x)
    return out.reshape(-1)[:n]


def init_value_net_params(key):
    """PyTorch-style Linear(1,1) init: uniform(-1, 1) since fan_in = 1."""
    k_w, k_b = jax.random.split(key)
    weight = jax.random.uniform(k_w, (1, 1), jnp.float32, minval=-1.0, maxval=1.0)
    bias = jax.random.uniform(k_b, (1,), jnp.float32, minval=-1.0, maxval=1.0)
    return weight, bias


if __name__ == "__main__":
    key = jax.random.PRNGKey(0)
    k_params, k_states = jax.random.split(key)
    weight, bias = init_value_net_params(k_params)

    # --- exact module semantics: single scalar state -> (1, 1) output ---
    state = 0.75
    out = jax.block_until_ready(value_net_forward(state, weight, bias))
    ref = jnp.asarray(state, jnp.float32).reshape(1, 1) @ weight.T + bias
    assert out.shape == (1, 1)
    assert out.dtype == jnp.float32
    assert jnp.allclose(out, ref, atol=1e-6), (out, ref)

    # --- batched, lane-dense path (perf-review recommendation) ---
    states = jax.random.normal(k_states, (2000,), jnp.float32)   # not a 128-multiple on purpose
    out_b = jax.block_until_ready(value_net_forward_batch(states, weight, bias))
    ref_b = states * weight[0, 0] + bias[0]
    assert out_b.shape == states.shape
    assert out_b.dtype == jnp.float32
    assert jnp.allclose(out_b, ref_b, atol=1e-6)

    print("KERNEL_OK")
</pallas_src>

<mosaic_0001>
module attributes {stable_mosaic.version = 11 : i64} {
  func.func @_value_net_scalar_kernel(%arg0: memref<1xf32, #tpu.memory_space<smem>>, %arg1: memref<1xf32, #tpu.memory_space<smem>>, %arg2: memref<1xf32, #tpu.memory_space<smem>>, %arg3: memref<1x1xf32, #tpu.memory_space<vmem>>) attributes {dimension_semantics = [], scalar_prefetch = 0 : i64, scratch_operands = 0 : i64, tpu.core_type = #tpu.core_type<tc>} {
    %c0 = arith.constant 0 : index
    %0 = memref.load %arg2[%c0] : memref<1xf32, #tpu.memory_space<smem>>
    %c0_0 = arith.constant 0 : index
    %1 = memref.load %arg0[%c0_0] : memref<1xf32, #tpu.memory_space<smem>>
    %2 = arith.mulf %0, %1 : f32
    %c0_1 = arith.constant 0 : index
    %3 = memref.load %arg1[%c0_1] : memref<1xf32, #tpu.memory_space<smem>>
    %4 = arith.addf %2, %3 : f32
    %5 = vector.broadcast %4 : f32 to vector<1x1xf32>
    %c0_2 = arith.constant 0 : index
    %c0_3 = arith.constant 0 : index
    %6 = vector.load %arg3[%c0_2, %c0_3] : memref<1x1xf32, #tpu.memory_space<vmem>>, vector<1x1xf32>
    tpu.vector_store %arg3[%c0_2, %c0_3], %5 {strides = array<i32>} : memref<1x1xf32, #tpu.memory_space<vmem>>, vector<1x1xf32>,
    return
  }
}

</mosaic_0001>

<bundles_post_ra>
// kernel: value_net_forward.1
= control target key start
LH: loop header
LB: loop body
LE: loop exit
PB: predicated region body
PF: predicated region fallthrough
CT: control target
= control target key end

     0   :  { %s107_s0 = inlined_call_operand.<no memory space> [shape: f32[1], index: 0, kind: input, shape index: {}]   ;;  %s108_s1 = inlined_call_operand.<no memory space> [shape: f32[1], index: 1, kind: input, shape index: {}]   ;;  %s109_s2 = inlined_call_operand.<no memory space> [shape: f32[1], index: 2, kind: input, shape index: {}]   ;;  %s110_s3 = inlined_call_operand.hbm [shape: f32[1,1], index: 3, kind: output, shape index: {}]  }
   0x1   :  { %s20_s16 = smul.f32 %s109_s2, %s107_s0 }
   0x2   :  { %11 = vsyncpa [#allocation6], 0  ;;  %s65_s17 = smov [#allocation5]   ;;  %vm24_vm0 = vcmask 0  }
   0x3   :  { %s32_s18 = sshll.u32 %s65_s17, 4  ;;  %s22_s21 = sadd.f32 %s20_s16, %s108_s1  ;;  %s33_s18 = int_to_ptr.vmem [resolvable:$true] %s32_s18 }
   0x4   :  { %s41_s22 = scalar_lea.vmem %s33_s18, 16  ;;  %s45_s23 = scalar_lea.vmem %s33_s18, 32 }
   0x5   :  { %v23_v0 = vstv %s22_s21  ;;  %p42_p0 = scmp.ne.s32.totalorder %s33_s18, %s41_s22  ;;  %p46_p1 = scmp.lt.s32.totalorder %s33_s18, %s33_s18 }
   0x6   :  { %25 = vst.msk [vmem:[#allocation5] sm:$0x1] %vm24_vm0, %v23_v0  ;;  %p47_p2 = scmp.lt.s32.totalorder %s45_s23, %s41_s22 }
   0x8   :  { %p48_p3 = por %p47_p2, %p46_p1 }
   0xa   :  { %p49_p4 = pnand %p48_p3, %p42_p0 }
   0xc   :  { %52 = shalt.err (!%p49_p4)
}
   0xd   :  { %s53_s24 = scalar_lea.hbm %s110_s3, 16 }
   0xe   :  { %p54_p5 = scmp.ne.s32.totalorder %s110_s3, %s53_s24  ;;  %p57_p6 = scmp.lt.u32.totalorder %s53_s24, %s110_s3 }
  0x10   :  { %p59_p7 = pnand %p57_p6, %p54_p5 }
  0x12   :  { %62 = shalt.err (!%p59_p7)
}
  0x13   :  { %35 = dma.vmem_to_hbm [thread:$0]  %s33_s18, 16, %s110_s3, [#allocation6]  }
  0x14   :  { %63 = dma.done.wait [#allocation6], 16  }
  0x15   :  { %64 = vsyncadd [#allocation6], 4294967280 }
  0x16   :  { %39 = vsyncpa [#allocation6], 1 }

</bundles_post_ra>
